<compile_context>
chip_gen: v7x
topology: tpu7x:2x2x1
jax: 0.10.0
libtpu: 0.0.40
codegen_flags: <defaults>
</compile_context>

<pallas_src>
import functools

import jax
import jax.numpy as jnp
from jax.experimental import pallas as pl
from jax.experimental.pallas import tpu as pltpu


_LANE = 128
_TARGET_BLOCK_BYTES = 4 << 20      # ~4 MiB x-block target (HBM-roofline sized)
_MIN_PALLAS_ELEMENTS = 1 << 14     # below this, launch overhead dominates


def _cdiv(a, b):
    return -(-a // b)


def _round_up(v, m):
    return ((v + m - 1) // m) * m


def _vmem_config():
    """Generation-aware scoped-VMEM limit and tile budget."""
    try:
        cap = int(pltpu.get_tpu_info().vmem_capacity_bytes)
    except Exception:
        cap = 64 << 20                      # conservative: v7x per-TC VMEM
    limit = min(cap * 3 // 4, cap - (8 << 20))   # 48 MiB on v7x, 96 MiB on v5e/v6e
    budget = cap // 2                            # 32 MiB on v7x, 64 MiB on v5e/v6e
    return int(limit), int(budget)


# ---------------------------------------------------------------------------
# Single-pass kernel: full batch resident per feature tile.
# ---------------------------------------------------------------------------
def _batchnorm_kernel(x_ref, gamma_ref, beta_ref, o_ref, *, eps, inv_n):
    # x_ref: (n_batch, tile_f) block — full batch resident, one feature tile.
    x = x_ref[...].astype(jnp.float32)

    # One sweep: sum and sum-of-squares (f32 accumulation).
    s = jnp.sum(x, axis=0, keepdims=True)                        # (1, tile_f)
    ss = jnp.sum(x * x, axis=0, keepdims=True)                   # (1, tile_f)
    mean = s * inv_n
    var = jnp.maximum(ss * inv_n - mean * mean, 0.0)             # biased (ddof=0)

    inv_std = jax.lax.rsqrt(var + eps)                           # EUP rsqrt
    scale = gamma_ref[...].astype(jnp.float32) * inv_std         # (1, tile_f)
    shift = beta_ref[...].astype(jnp.float32) - mean * scale     # (1, tile_f)

    # Per-element path: single FMA. Ragged (OOB) lanes of the last tile are
    # garbage but per-column independent and dropped by the masked store.
    o_ref[...] = (x * scale + shift).astype(o_ref.dtype)


def _choose_tile_f(n_batch, n_neurons, itemsize, tile_budget):
    """Feature-tile width for the single-pass (batch-resident) kernel."""
    # Per 128-lane column of one grid step: double-buffered x & out blocks in
    # their HBM dtype plus ~2 f32 temporaries inside the body.
    per_lane = n_batch * (4 * itemsize + 8)

    if n_neurons <= _LANE:
        # Single full-width tile (block dim == full array dim is always legal).
        if per_lane * n_neurons > tile_budget:
            return None                      # batch too large → two-pass path
        return int(n_neurons)

    f_ceil = _round_up(n_neurons, _LANE)
    vmem_tile = (tile_budget // max(per_lane, 1)) // _LANE * _LANE
    if vmem_tile < _LANE:
        return None                          # batch too large → two-pass path

    # Block-bytes target: big enough to hit the HBM roofline and amortize the
    # ~0.35 us per-grid-step overhead; no hard lane cap.
    target_tile = _round_up(_cdiv(_TARGET_BLOCK_BYTES, n_batch * itemsize), _LANE)
    tile_f = min(f_ceil, vmem_tile, target_tile)

    # Keep >=2 feature tiles so both v7x TensorCores get work.
    if f_ceil >= 2 * _LANE:
        tile_f = min(tile_f, _round_up(f_ceil // 2, _LANE))
    return int(max(tile_f, _LANE))


# ---------------------------------------------------------------------------
# Two-pass path for batches too large to keep resident per feature tile.
# Pass 1: sum / sum-of-squares accumulated over batch chunks (arbitrary axis),
#         folded into per-feature scale/shift at the last chunk.
# Pass 2: fused elementwise normalize (x * scale + shift).
# ---------------------------------------------------------------------------
def _bn_stats_kernel(x_ref, gamma_ref, beta_ref, scale_ref, shift_ref,
                     sum_ref, sumsq_ref, *, eps, n_batch, tile_b):
    k = pl.program_id(1)

    @pl.when(k == 0)
    def _():
        sum_ref[...] = jnp.zeros_like(sum_ref)
        sumsq_ref[...] = jnp.zeros_like(sumsq_ref)

    x = x_ref[...].astype(jnp.float32)
    # Mask rows of a ragged last batch chunk (padded reads may hold garbage).
    row = k * tile_b + jax.lax.broadcasted_iota(jnp.int32, x.shape, 0)
    x = jnp.where(row < n_batch, x, 0.0)

    sum_ref[...] += jnp.sum(x, axis=0, keepdims=True)
    sumsq_ref[...] += jnp.sum(x * x, axis=0, keepdims=True)

    @pl.when(k == pl.num_programs(1) - 1)
    def _():
        inv_n = 1.0 / n_batch
        mean = sum_ref[...] * inv_n
        var = jnp.maximum(sumsq_ref[...] * inv_n - mean * mean, 0.0)
        scale = gamma_ref[...].astype(jnp.float32) * jax.lax.rsqrt(var + eps)
        scale_ref[...] = scale
        shift_ref[...] = beta_ref[...].astype(jnp.float32) - mean * scale


def _bn_apply_kernel(x_ref, scale_ref, shift_ref, o_ref):
    o_ref[...] = (x_ref[...].astype(jnp.float32) * scale_ref[...]
                  + shift_ref[...]).astype(o_ref.dtype)


def _choose_two_pass_tiles(n_batch, n_neurons, itemsize, tile_budget):
    if n_neurons <= _LANE:
        tile_f = n_neurons
    else:
        f_ceil = _round_up(n_neurons, _LANE)
        tile_f = min(f_ceil, 1024)
        if f_ceil >= 2 * _LANE:
            tile_f = min(tile_f, _round_up(f_ceil // 2, _LANE))
    per_row = tile_f * (4 * itemsize + 8)
    tile_b = min(_TARGET_BLOCK_BYTES // max(tile_f * itemsize, 1),
                 tile_budget // max(per_row, 1))
    tile_b = max(8, (int(tile_b) // 8) * 8)
    tile_b = min(tile_b, max(8, (n_batch // 8) * 8))
    return tile_b, int(tile_f)


def _batchnorm_two_pass(x, gamma2d, beta2d, eps, tile_b, tile_f, vmem_limit):
    n_batch, n_neurons = x.shape
    nf = _cdiv(n_neurons, tile_f)
    nb = _cdiv(n_batch, tile_b)

    stats_kernel = functools.partial(
        _bn_stats_kernel, eps=eps, n_batch=n_batch, tile_b=tile_b)
    scale, shift = pl.pallas_call(
        stats_kernel,
        out_shape=(jax.ShapeDtypeStruct((1, n_neurons), jnp.float32),
                   jax.ShapeDtypeStruct((1, n_neurons), jnp.float32)),
        grid_spec=pltpu.PrefetchScalarGridSpec(
            num_scalar_prefetch=0,
            grid=(nf, nb),
            in_specs=[pl.BlockSpec((tile_b, tile_f), lambda j, k: (k, j)),
                      pl.BlockSpec((1, tile_f), lambda j, k: (0, j)),
                      pl.BlockSpec((1, tile_f), lambda j, k: (0, j))],
            out_specs=[pl.BlockSpec((1, tile_f), lambda j, k: (0, j)),
                       pl.BlockSpec((1, tile_f), lambda j, k: (0, j))],
            scratch_shapes=[pltpu.VMEM((1, tile_f), jnp.float32),
                            pltpu.VMEM((1, tile_f), jnp.float32)]),
        compiler_params=pltpu.CompilerParams(
            dimension_semantics=("parallel", "arbitrary"),
            vmem_limit_bytes=vmem_limit),
    )(x, gamma2d, beta2d)

    out = pl.pallas_call(
        _bn_apply_kernel,
        out_shape=jax.ShapeDtypeStruct((n_batch, n_neurons), x.dtype),
        grid_spec=pltpu.PrefetchScalarGridSpec(
            num_scalar_prefetch=0,
            grid=(nf, nb),
            in_specs=[pl.BlockSpec((tile_b, tile_f), lambda j, k: (k, j)),
                      pl.BlockSpec((1, tile_f), lambda j, k: (0, j)),
                      pl.BlockSpec((1, tile_f), lambda j, k: (0, j))],
            out_specs=pl.BlockSpec((tile_b, tile_f), lambda j, k: (k, j))),
        compiler_params=pltpu.CompilerParams(
            dimension_semantics=("parallel", "parallel"),
            vmem_limit_bytes=vmem_limit),
    )(x, scale, shift)
    return out


# ---------------------------------------------------------------------------
# Wrapper (forward pass of CustomBatchNormAutograd)
# ---------------------------------------------------------------------------
def _batchnorm_jnp(x, gamma, beta, eps):
    mean = x.mean(axis=0)
    var = x.var(axis=0)                  # ddof=0 == torch.var(unbiased=False)
    return gamma * (x - mean) / jnp.sqrt(var + eps) + beta


def custom_batchnorm(x, gamma, beta, eps=1e-5, *, force_pallas=False,
                     _force_two_pass=False, _two_pass_tiles=None):
    """Batch norm forward: normalize over the batch dim (axis 0).

    Args:
      x:     (n_batch, n_neurons)
      gamma: (n_neurons,)
      beta:  (n_neurons,)
    Returns:
      (n_batch, n_neurons) batch-normalized tensor.
    """
    assert x.ndim == 2
    n_batch, n_neurons = x.shape
    assert gamma.shape == (n_neurons,)
    assert beta.shape == (n_neurons,)

    # Tiny problems: custom-call + per-grid-step overhead dominates; jnp wins.
    if (not force_pallas and not _force_two_pass
            and (n_neurons < _LANE or n_batch * n_neurons < _MIN_PALLAS_ELEMENTS)):
        return _batchnorm_jnp(x, gamma, beta, eps)

    vmem_limit, tile_budget = _vmem_config()
    itemsize = jnp.dtype(x.dtype).itemsize
    gamma2d = gamma.reshape(1, n_neurons)
    beta2d = beta.reshape(1, n_neurons)

    tile_f = None if _force_two_pass else _choose_tile_f(
        n_batch, n_neurons, itemsize, tile_budget)

    if tile_f is None:
        # Batch too large to keep resident per feature tile (or forced):
        # two-pass stats + normalize, still fully on the Pallas path.
        if _two_pass_tiles is not None:
            tile_b, tf = _two_pass_tiles
        else:
            tile_b, tf = _choose_two_pass_tiles(
                n_batch, n_neurons, itemsize, tile_budget)
        return _batchnorm_two_pass(x, gamma2d, beta2d, eps, tile_b, tf, vmem_limit)

    n_tiles = _cdiv(n_neurons, tile_f)
    kernel = functools.partial(_batchnorm_kernel, eps=eps, inv_n=1.0 / n_batch)

    return pl.pallas_call(
        kernel,
        out_shape=jax.ShapeDtypeStruct((n_batch, n_neurons), x.dtype),
        grid_spec=pltpu.PrefetchScalarGridSpec(
            num_scalar_prefetch=0,
            grid=(n_tiles,),
            in_specs=[
                pl.BlockSpec((n_batch, tile_f), lambda j: (0, j)),
                pl.BlockSpec((1, tile_f), lambda j: (0, j)),
                pl.BlockSpec((1, tile_f), lambda j: (0, j)),
            ],
            out_specs=pl.BlockSpec((n_batch, tile_f), lambda j: (0, j)),
        ),
        compiler_params=pltpu.CompilerParams(
            dimension_semantics=("parallel",),      # feature tiles independent
            vmem_limit_bytes=vmem_limit,
        ),
    )(x, gamma2d, beta2d)


# ---------------------------------------------------------------------------
# Test
# ---------------------------------------------------------------------------
if __name__ == "__main__":
    eps = 1e-5
    key = jax.random.PRNGKey(0)
    k1, k2, k3, k4, k5, k6 = jax.random.split(key, 6)

    # Case 1: module-scale shape (n_batch=8, n_neurons=32).
    # Forced through the Pallas path (full-width 32-lane block) and also via
    # the default jnp fast-path dispatch.
    x_s = jax.random.normal(k1, (8, 32), dtype=jnp.float32)
    gamma_s = jnp.ones((32,), dtype=jnp.float32)   # nn.Parameter(torch.ones)
    beta_s = jnp.zeros((32,), dtype=jnp.float32)   # nn.Parameter(torch.zeros)

    out_s = jax.block_until_ready(
        custom_batchnorm(x_s, gamma_s, beta_s, eps=eps, force_pallas=True))
    ref_s = _batchnorm_jnp(x_s, gamma_s, beta_s, eps)
    assert jnp.allclose(out_s, ref_s, atol=2e-5, rtol=2e-5), "pallas (small) mismatch"

    out_s_fast = jax.block_until_ready(custom_batchnorm(x_s, gamma_s, beta_s, eps=eps))
    assert jnp.allclose(out_s_fast, ref_s, atol=2e-5, rtol=2e-5), "jnp fallback mismatch"

    # Case 2: lane-dense shape, tiled Pallas path (2 feature tiles for megacore),
    # non-trivial gamma/beta to exercise the affine fold.
    x_b = jax.random.normal(k2, (64, 512), dtype=jnp.float32)
    gamma_b = 1.0 + 0.1 * jax.random.normal(k3, (512,), dtype=jnp.float32)
    beta_b = 0.1 * jax.random.normal(k4, (512,), dtype=jnp.float32)

    out_b = jax.block_until_ready(custom_batchnorm(x_b, gamma_b, beta_b, eps=eps))
    ref_b = _batchnorm_jnp(x_b, gamma_b, beta_b, eps)
    assert jnp.allclose(out_b, ref_b, atol=2e-5, rtol=2e-5), "pallas (tiled) mismatch"

    # Case 3: ragged feature count (no pad, masked edge stores).
    x_r = jax.random.normal(k5, (32, 200), dtype=jnp.float32)
    gamma_r = 1.0 + 0.1 * jax.random.normal(k6, (200,), dtype=jnp.float32)
    beta_r = 0.05 * jnp.ones((200,), dtype=jnp.float32)

    out_r = jax.block_until_ready(
        custom_batchnorm(x_r, gamma_r, beta_r, eps=eps, force_pallas=True))
    ref_r = _batchnorm_jnp(x_r, gamma_r, beta_r, eps)
    assert jnp.allclose(out_r, ref_r, atol=2e-5, rtol=2e-5), "pallas (ragged) mismatch"

    # Case 4: two-pass large-batch path forced on a small shape, with a ragged
    # last batch chunk (n_batch=40, tile_b=16) and ragged last feature tile.
    x_t = jax.random.normal(k2, (40, 384), dtype=jnp.float32)
    gamma_t = 1.0 + 0.1 * jax.random.normal(k3, (384,), dtype=jnp.float32)
    beta_t = 0.1 * jax.random.normal(k4, (384,), dtype=jnp.float32)

    out_t = jax.block_until_ready(
        custom_batchnorm(x_t, gamma_t, beta_t, eps=eps,
                         _force_two_pass=True, _two_pass_tiles=(16, 128)))
    ref_t = _batchnorm_jnp(x_t, gamma_t, beta_t, eps)
    assert jnp.allclose(out_t, ref_t, atol=2e-5, rtol=2e-5), "pallas (two-pass) mismatch"

    print("KERNEL_OK")
</pallas_src>

<mosaic_0001>
module attributes {stable_mosaic.version = 11 : i64} {
  func.func @_batchnorm_kernel(%arg0: i32, %arg1: memref<8x32xf32, #tpu.memory_space<vmem>>, %arg2: memref<1x32xf32, #tpu.memory_space<vmem>>, %arg3: memref<1x32xf32, #tpu.memory_space<vmem>>, %arg4: memref<8x32xf32, #tpu.memory_space<vmem>>) attributes {dimension_semantics = [#tpu.dimension_semantics<parallel>], iteration_bounds = array<i64: 1>, scalar_prefetch = 0 : i64, scratch_operands = 0 : i64, tpu.core_type = #tpu.core_type<tc>, window_params = [{transform_indices = @transform_0, window_bounds = array<i64: 8, 32>}, {transform_indices = @transform_1, window_bounds = array<i64: 1, 32>}, {transform_indices = @transform_2, window_bounds = array<i64: 1, 32>}, {transform_indices = @transform_3, window_bounds = array<i64: 8, 32>}]} {
    %c0 = arith.constant 0 : index
    %c0_0 = arith.constant 0 : index
    %0 = vector.load %arg1[%c0, %c0_0] : memref<8x32xf32, #tpu.memory_space<vmem>>, vector<8x32xf32>
    %cst = arith.constant dense<0.000000e+00> : vector<32xf32>
    %1 = vector.multi_reduction <add>, %0, %cst [0] : vector<8x32xf32> to vector<32xf32>
    %2 = vector.shape_cast %1 : vector<32xf32> to vector<1x32xf32>
    %3 = arith.mulf %0, %0 : vector<8x32xf32>
    %cst_1 = arith.constant dense<0.000000e+00> : vector<32xf32>
    %4 = vector.multi_reduction <add>, %3, %cst_1 [0] : vector<8x32xf32> to vector<32xf32>
    %5 = vector.shape_cast %4 : vector<32xf32> to vector<1x32xf32>
    %cst_2 = arith.constant 1.250000e-01 : f32
    %6 = vector.broadcast %cst_2 : f32 to vector<1x32xf32>
    %7 = arith.mulf %2, %6 : vector<1x32xf32>
    %cst_3 = arith.constant 1.250000e-01 : f32
    %8 = vector.broadcast %cst_3 : f32 to vector<1x32xf32>
    %9 = arith.mulf %5, %8 : vector<1x32xf32>
    %10 = arith.mulf %7, %7 : vector<1x32xf32>
    %11 = arith.subf %9, %10 : vector<1x32xf32>
    %cst_4 = arith.constant 0.000000e+00 : f32
    %12 = vector.broadcast %cst_4 : f32 to vector<1x32xf32>
    %13 = arith.maximumf %11, %12 : vector<1x32xf32>
    %cst_5 = arith.constant 9.99999974E-6 : f32
    %14 = vector.broadcast %cst_5 : f32 to vector<1x32xf32>
    %15 = arith.addf %13, %14 : vector<1x32xf32>
    %16 = math.rsqrt %15 : vector<1x32xf32>
    %c0_6 = arith.constant 0 : index
    %c0_7 = arith.constant 0 : index
    %17 = vector.load %arg2[%c0_6, %c0_7] : memref<1x32xf32, #tpu.memory_space<vmem>>, vector<1x32xf32>
    %18 = arith.mulf %17, %16 : vector<1x32xf32>
    %c0_8 = arith.constant 0 : index
    %c0_9 = arith.constant 0 : index
    %19 = vector.load %arg3[%c0_8, %c0_9] : memref<1x32xf32, #tpu.memory_space<vmem>>, vector<1x32xf32>
    %20 = arith.mulf %7, %18 : vector<1x32xf32>
    %21 = arith.subf %19, %20 : vector<1x32xf32>
    %22 = vector.broadcast %18 : vector<1x32xf32> to vector<8x32xf32>
    %23 = arith.mulf %0, %22 : vector<8x32xf32>
    %24 = vector.broadcast %21 : vector<1x32xf32> to vector<8x32xf32>
    %25 = arith.addf %23, %24 : vector<8x32xf32>
    %c0_10 = arith.constant 0 : index
    %c0_11 = arith.constant 0 : index
    %26 = vector.load %arg4[%c0_10, %c0_11] : memref<8x32xf32, #tpu.memory_space<vmem>>, vector<8x32xf32>
    tpu.vector_store %arg4[%c0_10, %c0_11], %25 {strides = array<i32>} : memref<8x32xf32, #tpu.memory_space<vmem>>, vector<8x32xf32>,
    return
  }
  func.func @transform_0(%arg0: i32) -> (i32, i32) {
    %c0_i32 = arith.constant 0 : i32
    %c0_i32_0 = arith.constant 0 : i32
    return %c0_i32, %arg0 : i32, i32
  }
  func.func @transform_1(%arg0: i32) -> (i32, i32) {
    %c0_i32 = arith.constant 0 : i32
    %c0_i32_0 = arith.constant 0 : i32
    return %c0_i32, %arg0 : i32, i32
  }
  func.func @transform_2(%arg0: i32) -> (i32, i32) {
    %c0_i32 = arith.constant 0 : i32
    %c0_i32_0 = arith.constant 0 : i32
    return %c0_i32, %arg0 : i32, i32
  }
  func.func @transform_3(%arg0: i32) -> (i32, i32) {
    %c0_i32 = arith.constant 0 : i32
    %c0_i32_0 = arith.constant 0 : i32
    return %c0_i32, %arg0 : i32, i32
  }
}

</mosaic_0001>

<bundles_post_ra>
// kernel: tpu_custom_call.1
= control target key start
LH: loop header
LB: loop body
LE: loop exit
PB: predicated region body
PF: predicated region fallthrough
CT: control target
= control target key end

     0   :  { %8 = vsyncpa [#allocation3], 0  ;;  %s193_s0 = inlined_call_operand.hbm [shape: f32[8,32], index: 0, kind: input, shape index: {}]   ;;  %s194_s1 = inlined_call_operand.vmem [shape: f32[1,32], index: 1, kind: input, shape index: {}]   ;;  %s195_s2 = inlined_call_operand.vmem [shape: f32[1,32], index: 2, kind: input, shape index: {}]   ;;  %s196_s3 = inlined_call_operand.hbm [shape: f32[8,32], index: 3, kind: output, shape index: {}]  }
   0x1   :  { %9 = vsyncpa [#allocation4], 0  ;;  %s138_s12 = smov [#allocation2]   ;;  %s90_s16 = scalar_lea.hbm %s193_s0, 128 }
   0x2   :  { %s16_s13 = sshll.u32 %s138_s12, 4  ;;  %p91_p0 = scmp.ne.s32.totalorder %s193_s0, %s90_s16  ;;  %s17_s13 = int_to_ptr.vmem [resolvable:$true] %s16_s13 }
   0x3   :  { %p94_p1 = scmp.lt.u32.totalorder %s90_s16, %s193_s0 }
   0x5   :  { %p96_p2 = pnand %p94_p1, %p91_p0 }
   0x7   :  { %99 = shalt.err (!%p96_p2)
}
   0x8   :  { %s100_s21 = scalar_lea.vmem %s17_s13, 128  ;;  %p105_p4 = scmp.lt.s32.totalorder %s17_s13, %s17_s13 }
   0x9   :  { %p101_p3 = scmp.ne.s32.totalorder %s17_s13, %s100_s21  ;;  %p106_p5 = scmp.lt.s32.totalorder %s100_s21, %s100_s21 }
   0xb   :  { %p107_p6 = por %p106_p5, %p105_p4 }
   0xd   :  { %p108_p7 = pnand %p107_p6, %p101_p3 }
   0xf   :  { %111 = shalt.err (!%p108_p7)
}
  0x10   :  { %19 = dma.hbm_to_vmem [thread:$0]  %s193_s0, 128, %s17_s13, [#allocation3]  }
  0x11   :  { %134 = dma.done.wait [#allocation3], 128  }
  0x12   :  { %135 = vsyncadd [#allocation3], 4294967168  ;;  %vm28_vm0 = vcmask 261120   ;;  %v27_v0 = vld [vmem:[#allocation2] sm:$0xff]  ;;  %v57_v22 = vlaneseq  ;;  %s139_s27 = smov [#allocation5]  }
  0x13   :  { %v29_v1 = vsel %vm28_vm0, %v27_v0, 0.0  ;;  %v36_v2 = vmul.f32 %v27_v0, %v27_v0  ;;  %v51_v24 = vld [vmem:[%s194_s1] sm:$0x1]  ;;  %s77_s28 = sshll.u32 %s139_s27, 4  ;;  %s78_s28 = int_to_ptr.vmem [resolvable:$true] %s77_s28 }
  0x14   :  { %v30_v3 = vrot.slane %v29_v1, 4  ;;  %v58_v23 = vshrl.u32 %v57_v22, 7  ;;  %v53_v28 = vld [vmem:[%s195_s2] sm:$0x1]  ;;  %s112_s29 = scalar_lea.vmem %s78_s28, 128  ;;  %p117_p9 = scmp.lt.s32.totalorder %s78_s28, %s78_s28 }
  0x15   :  { %v37_v4 = vsel %vm28_vm0, %v36_v2, 0.0  ;;  %p113_p8 = scmp.ne.s32.totalorder %s78_s28, %s112_s29  ;;  %p118_p10 = scmp.lt.s32.totalorder %s112_s29, %s112_s29 }
  0x16   :  { %v31_v5 = vadd.f32 %v30_v3, %v29_v1  ;;  %v38_v6 = vrot.slane %v37_v4, 4  ;;  %v59_v25 = vsub.s32 0, %v58_v23 }
  0x17   :  { %p119_p11 = por %p118_p10, %p117_p9 }
  0x18   :  { %v32_v7 = vrot.slane %v31_v5, 2  ;;  %v39_v8 = vadd.f32 %v38_v6, %v37_v4 }
  0x19   :  { %p120_p12 = pnand %p119_p11, %p113_p8 }
  0x1a   :  { %v33_v9 = vadd.f32 %v32_v7, %v31_v5  ;;  %v40_v10 = vrot.slane %v39_v8, 2 }
  0x1c   :  { %v34_v11 = vrot.slane %v33_v9, 1  ;;  %v41_v12 = vadd.f32 %v40_v10, %v39_v8 }
  0x1e   :  { %v35_v13 = vadd.f32 %v34_v11, %v33_v9  ;;  %v42_v14 = vrot.slane %v41_v12, 1 }
  0x20   :  { %v43_v15 = vadd.f32 %v42_v14, %v41_v12  ;;  %v44_v16 = vmul.f32 0.125, %v35_v13 }
  0x22   :  { %v45_v17 = vmul.f32 0.125, %v43_v15  ;;  %v46_v18 = vmul.f32 %v44_v16, %v44_v16 }
  0x24   :  { %v47_v19 = vsub.f32 %v45_v17, %v46_v18 }
  0x26   :  { %v48_v20 = vmax.f32 %v47_v19, 0.0 }
  0x28   :  { %v49_v21 = vadd.f32 1e-05, %v48_v20 }
  0x2a   :  { %88 = vrsqrt.f32 %v49_v21 }
  0x34   :  { %v89_v26 = vpop.eup %88 }
  0x35   :  { %v52_v27 = vmul.f32 %v89_v26, %v51_v24 }
  0x37   :  { %v54_v29 = vmul.f32 %v52_v27, %v44_v16  ;;  %v60_v30 = vrot.slane %v52_v27, %v59_v25 }
  0x39   :  { %v55_v31 = vsub.f32 %v53_v28, %v54_v29  ;;  %v62_v32 = vmul.f32 %v60_v30, %v27_v0 }
  0x3b   :  { %v67_v33 = vrot.slane %v55_v31, %v59_v25 }
  0x3d   :  { %v69_v34 = vadd.f32 %v67_v33, %v62_v32 }
  0x3f   :  { %70 = vst.msk [vmem:[#allocation5] sm:$0xff] %vm28_vm0, %v69_v34 }
  0x40   :  { %123 = shalt.err (!%p120_p12)
}
  0x41   :  { %s124_s30 = scalar_lea.hbm %s196_s3, 128 }
  0x42   :  { %p125_p13 = scmp.ne.s32.totalorder %s196_s3, %s124_s30  ;;  %p128_p0 = scmp.lt.u32.totalorder %s124_s30, %s196_s3 }
  0x44   :  { %p130_p1 = pnand %p128_p0, %p125_p13 }
  0x46   :  { %133 = shalt.err (!%p130_p1)
}
  0x47   :  { %80 = dma.vmem_to_hbm [thread:$0]  %s78_s28, 128, %s196_s3, [#allocation4]  }
  0x48   :  { %136 = dma.done.wait [#allocation4], 128  }
  0x49   :  { %137 = vsyncadd [#allocation4], 4294967168 }
  0x4a   :  { %84 = vsyncpa [#allocation3], 1 }
  0x4b   :  { %85 = vsyncpa [#allocation4], 1 }

</bundles_post_ra>
